<compile_context>
chip_gen: v7x
topology: tpu7x:2x2x1
jax: 0.10.0
libtpu: 0.0.40
codegen_flags: <defaults>
</compile_context>

<pallas_src>
import functools

import jax
import jax.numpy as jnp
from jax.experimental import pallas as pl
from jax.experimental.pallas import tpu as pltpu

CROP = 8          # crop_size (scaled down from 224 for the small synthetic shapes)
LANE = 128        # TPU lane width
SUBLANE = 8       # f32 sublane granule
TILE_N_MAX = 256  # batch-tile cap: full MXU M dim on v6e/v7x
TILE_F_MAX = 2048 # contraction-tile cap; keeps per-step VMEM small on all gens


def _round_up(x, m):
    return ((x + m - 1) // m) * m


def classifier_kernel(feats_ref, w_ref, b_ref, o_ref, acc_ref):
    # feats_ref: (TILE_N, TILE_F)  bf16 lane-dense features (normalization pre-folded)
    # w_ref:     (TILE_F, K_pad)   weight block (resident when F fits one tile)
    # b_ref:     (1, K_pad)        f32 folded bias, resident
    # o_ref:     (TILE_N, K_pad)   f32 logits
    # acc_ref:   (TILE_N, K_pad)   f32 accumulator scratch over the F grid axis
    k = pl.program_id(1)

    @pl.when(k == 0)
    def _init():
        acc_ref[...] = jnp.zeros_like(acc_ref)

    acc_ref[...] += jnp.dot(feats_ref[...], w_ref[...],
                            preferred_element_type=jnp.float32)

    @pl.when(k == pl.num_programs(1) - 1)
    def _finalize():
        o_ref[...] = (acc_ref[...] + b_ref[...]).astype(o_ref.dtype)


@functools.partial(jax.jit, static_argnames=("crop_size", "compute_dtype"))
def crop_and_normalize_classify(x, mu, sigma, w, b, *, crop_size=CROP,
                                compute_dtype=jnp.bfloat16):
    """CenterCrop -> (x - mu)/sigma -> Linear classifier (matmul in Pallas)."""
    N, C, H, W = x.shape
    F = C * crop_size * crop_size
    K = w.shape[1]

    # ---- CenterCrop (static slice: only the cropped bytes reach the kernel) -
    top = (H - crop_size) // 2
    left = (W - crop_size) // 2
    xc = jax.lax.slice(
        x, (0, 0, top, left), (N, C, top + crop_size, left + crop_size))
    feats = xc.reshape(N, F)            # NCHW flatten order, lane-dense (N, F)

    # ---- Fold (x - mu)/sigma into the classifier weights/bias (f32) ---------
    inv_sigma = (1.0 / sigma.reshape(C)).astype(jnp.float32)           # (C,)
    scale_f = jnp.repeat(inv_sigma, crop_size * crop_size)             # (F,)
    mu_f = jnp.repeat(mu.reshape(C).astype(jnp.float32),
                      crop_size * crop_size)                           # (F,)
    w_fold = w.astype(jnp.float32) * scale_f[:, None]                  # (F, K)
    b_fold = b.astype(jnp.float32).reshape(1, K) - mu_f[None, :] @ w_fold

    # ---- Tile selection ------------------------------------------------------
    # Batch: whole batch in one tile when small; 256-row tiles (>=2 grid steps,
    # sharded across v7x's two TensorCores) once the batch is large enough.
    TILE_N = min(TILE_N_MAX, _round_up(N, SUBLANE))
    N_pad = _round_up(N, TILE_N)
    n_tiles = N_pad // TILE_N

    # Contraction: single step (streamed feats stay unpadded in F) when F is
    # small; otherwise 2048-column tiles over an "arbitrary" grid axis.
    if F <= TILE_F_MAX:
        TILE_F, F_pad = F, F
    else:
        TILE_F = TILE_F_MAX                       # multiple of 128
        F_pad = _round_up(F, TILE_F)
    f_tiles = F_pad // TILE_F
    resident_w = f_tiles == 1

    K_pad = _round_up(K, LANE)                    # unmasked full-lane stores
    cdt_size = jnp.dtype(compute_dtype).itemsize

    # ---- Cast + pad (jnp.pad fuses with crop/reshape; no alloc+scatter) ------
    feats_p = jnp.pad(feats.astype(compute_dtype),
                      ((0, N_pad - N), (0, F_pad - F)))
    w_p = jnp.pad(w_fold.astype(compute_dtype),
                  ((0, F_pad - F), (0, K_pad - K)))
    b_p = jnp.pad(b_fold, ((0, 0), (0, K_pad - K)))          # stays f32

    # ---- VMEM budget: derived from actual tiles, capped for v7x (64 MiB) -----
    vmem_needed = (
        2 * TILE_N * TILE_F * cdt_size                        # feats, double-buffered
        + (1 if resident_w else 2) * TILE_F * K_pad * cdt_size
        + K_pad * 4                                           # bias, single-buffered
        + 2 * TILE_N * K_pad * 4                              # output, double-buffered
        + TILE_N * K_pad * 4)                                 # accumulator scratch
    vmem_limit = int(min(48 * 1024 * 1024,
                         max(16 * 1024 * 1024, vmem_needed * 3 // 2)))

    cost = pl.CostEstimate(
        flops=2 * N_pad * F_pad * K_pad,
        transcendentals=0,
        bytes_accessed=(N_pad * F_pad * cdt_size
                        + (1 if resident_w else n_tiles) * F_pad * K_pad * cdt_size
                        + K_pad * 4
                        + N_pad * K_pad * 4))

    if resident_w:
        # Constant index_map -> no re-DMA; Buffered(1) avoids reserving a 2nd buffer.
        w_spec = pl.BlockSpec((TILE_F, K_pad), lambda i, k: (k, 0),
                              pipeline_mode=pl.Buffered(1))
    else:
        # Weight blocks change along the F axis: keep default double-buffering.
        w_spec = pl.BlockSpec((TILE_F, K_pad), lambda i, k: (k, 0))
    b_spec = pl.BlockSpec((1, K_pad), lambda i, k: (0, 0),
                          pipeline_mode=pl.Buffered(1))

    out_p = pl.pallas_call(
        classifier_kernel,
        out_shape=jax.ShapeDtypeStruct((N_pad, K_pad), jnp.float32),
        grid_spec=pltpu.PrefetchScalarGridSpec(
            num_scalar_prefetch=0,
            grid=(n_tiles, f_tiles),
            in_specs=[
                pl.BlockSpec((TILE_N, TILE_F), lambda i, k: (i, k)),   # streamed feats
                w_spec,                                                # weights
                b_spec,                                                # bias
            ],
            out_specs=pl.BlockSpec((TILE_N, K_pad), lambda i, k: (i, 0)),
            scratch_shapes=[pltpu.VMEM((TILE_N, K_pad), jnp.float32)],
        ),
        compiler_params=pltpu.CompilerParams(
            dimension_semantics=("parallel", "arbitrary"),
            vmem_limit_bytes=vmem_limit,
        ),
        cost_estimate=cost,
    )(feats_p, w_p, b_p)

    return out_p[:N, :K]


def _reference(x, mu, sigma, w, b, crop_size=CROP):
    N, C, H, W = x.shape
    top = (H - crop_size) // 2
    left = (W - crop_size) // 2
    xc = x[:, :, top:top + crop_size, left:left + crop_size]
    xn = (xc - mu) / sigma
    return xn.reshape(N, -1) @ w + b


if __name__ == "__main__":
    key = jax.random.PRNGKey(0)
    k_x, k_w, k_b = jax.random.split(key, 3)

    N, C, H, W = 2, 3, 16, 16
    NUM_CLASSES = 10
    F = C * CROP * CROP

    x = jax.random.uniform(k_x, (N, C, H, W), dtype=jnp.float32)
    mu = jnp.array([0.485, 0.456, 0.406], dtype=jnp.float32).reshape(1, C, 1, 1)
    sigma = jnp.array([0.229, 0.224, 0.225], dtype=jnp.float32).reshape(1, C, 1, 1)

    # deterministic synthetic classifier (Linear head) parameters
    w = jax.random.normal(k_w, (F, NUM_CLASSES), dtype=jnp.float32) * 0.02
    b = jax.random.normal(k_b, (1, NUM_CLASSES), dtype=jnp.float32) * 0.01

    out = crop_and_normalize_classify(x, mu, sigma, w, b)
    out = jax.block_until_ready(out)

    ref = _reference(x, mu, sigma, w, b)
    assert out.shape == (N, NUM_CLASSES)
    # bf16 feats/weights on the MXU (f32 accumulation) -> relaxed tolerance.
    # For bit-tight agreement, call with compute_dtype=jnp.float32 instead.
    assert jnp.allclose(out, ref, atol=5e-2, rtol=5e-2), "mismatch vs reference"

    print("KERNEL_OK")
</pallas_src>

<mosaic_0001>
module attributes {stable_mosaic.version = 11 : i64} {
  func.func @classifier_kernel(%arg0: i32, %arg1: i32, %arg2: memref<8x192xbf16, #tpu.memory_space<vmem>>, %arg3: memref<192x128xbf16, #tpu.memory_space<vmem>>, %arg4: memref<1x128xf32, #tpu.memory_space<vmem>>, %arg5: memref<8x128xf32, #tpu.memory_space<vmem>>, %arg6: memref<8x128xf32, #tpu.memory_space<vmem>>) attributes {dimension_semantics = [#tpu.dimension_semantics<parallel>, #tpu.dimension_semantics<arbitrary>], iteration_bounds = array<i64: 1, 1>, scalar_prefetch = 0 : i64, scratch_operands = 1 : i64, tpu.core_type = #tpu.core_type<tc>, window_params = [{transform_indices = @transform_0, window_bounds = array<i64: 8, 192>}, {pipeline_mode = #tpu.pipeline_mode<synchronous>, transform_indices = @transform_1, window_bounds = array<i64: 192, 128>}, {pipeline_mode = #tpu.pipeline_mode<synchronous>, transform_indices = @transform_2, window_bounds = array<i64: 1, 128>}, {transform_indices = @transform_3, window_bounds = array<i64: 8, 128>}]} {
    %c0_i32 = arith.constant 0 : i32
    %0 = arith.cmpi eq, %arg1, %c0_i32 : i32
    %1 = arith.extui %0 : i1 to i32
    %c0_i32_0 = arith.constant 0 : i32
    %2 = arith.cmpi ne, %1, %c0_i32_0 : i32
    scf.if %2 {
      %cst_10 = arith.constant 0.000000e+00 : f32
      %12 = vector.broadcast %cst_10 : f32 to vector<8x128xf32>
      %c0_11 = arith.constant 0 : index
      %c0_12 = arith.constant 0 : index
      %13 = vector.load %arg6[%c0_11, %c0_12] : memref<8x128xf32, #tpu.memory_space<vmem>>, vector<8x128xf32>
      tpu.vector_store %arg6[%c0_11, %c0_12], %12 {strides = array<i32>} : memref<8x128xf32, #tpu.memory_space<vmem>>, vector<8x128xf32>,
    } else {
    }
    %c0 = arith.constant 0 : index
    %c0_1 = arith.constant 0 : index
    %3 = vector.load %arg6[%c0, %c0_1] : memref<8x128xf32, #tpu.memory_space<vmem>>, vector<8x128xf32>
    %c0_2 = arith.constant 0 : index
    %c0_3 = arith.constant 0 : index
    %4 = vector.load %arg2[%c0_2, %c0_3] : memref<8x192xbf16, #tpu.memory_space<vmem>>, vector<8x192xbf16>
    %c0_4 = arith.constant 0 : index
    %c0_5 = arith.constant 0 : index
    %5 = vector.load %arg3[%c0_4, %c0_5] : memref<192x128xbf16, #tpu.memory_space<vmem>>, vector<192x128xbf16>
    %cst = arith.constant dense<0.000000e+00> : vector<8x128xf32>
    %6 = tpu.matmul %4, %5, %cst {dimension_numbers = #tpu.dot_dimension_numbers<[1], [0], [0], [1], [0, 0, 1, 1], [], []>} : vector<8x192xbf16>, vector<192x128xbf16>, vector<8x128xf32> -> vector<8x128xf32>
    %7 = arith.addf %3, %6 : vector<8x128xf32>
    %c0_6 = arith.constant 0 : index
    %c0_7 = arith.constant 0 : index
    %8 = vector.load %arg6[%c0_6, %c0_7] : memref<8x128xf32, #tpu.memory_space<vmem>>, vector<8x128xf32>
    tpu.vector_store %arg6[%c0_6, %c0_7], %7 {strides = array<i32>} : memref<8x128xf32, #tpu.memory_space<vmem>>, vector<8x128xf32>,
    %c0_i32_8 = arith.constant 0 : i32
    %9 = arith.cmpi eq, %arg1, %c0_i32_8 : i32
    %10 = arith.extui %9 : i1 to i32
    %c0_i32_9 = arith.constant 0 : i32
    %11 = arith.cmpi ne, %10, %c0_i32_9 : i32
    scf.if %11 {
      %c0_10 = arith.constant 0 : index
      %c0_11 = arith.constant 0 : index
      %12 = vector.load %arg6[%c0_10, %c0_11] : memref<8x128xf32, #tpu.memory_space<vmem>>, vector<8x128xf32>
      %c0_12 = arith.constant 0 : index
      %c0_13 = arith.constant 0 : index
      %13 = vector.load %arg4[%c0_12, %c0_13] : memref<1x128xf32, #tpu.memory_space<vmem>>, vector<1x128xf32>
      %14 = vector.broadcast %13 : vector<1x128xf32> to vector<8x128xf32>
      %15 = arith.addf %12, %14 : vector<8x128xf32>
      %c0_14 = arith.constant 0 : index
      %c0_15 = arith.constant 0 : index
      %16 = vector.load %arg5[%c0_14, %c0_15] : memref<8x128xf32, #tpu.memory_space<vmem>>, vector<8x128xf32>
      tpu.vector_store %arg5[%c0_14, %c0_15], %15 {strides = array<i32>} : memref<8x128xf32, #tpu.memory_space<vmem>>, vector<8x128xf32>,
    } else {
    }
    return
  }
  func.func @transform_0(%arg0: i32, %arg1: i32) -> (i32, i32) {
    %c0_i32 = arith.constant 0 : i32
    return %arg0, %arg1 : i32, i32
  }
  func.func @transform_1(%arg0: i32, %arg1: i32) -> (i32, i32) {
    %c0_i32 = arith.constant 0 : i32
    %c0_i32_0 = arith.constant 0 : i32
    return %arg1, %c0_i32 : i32, i32
  }
  func.func @transform_2(%arg0: i32, %arg1: i32) -> (i32, i32) {
    %c0_i32 = arith.constant 0 : i32
    %c0_i32_0 = arith.constant 0 : i32
    %c0_i32_1 = arith.constant 0 : i32
    return %c0_i32, %c0_i32_0 : i32, i32
  }
  func.func @transform_3(%arg0: i32, %arg1: i32) -> (i32, i32) {
    %c0_i32 = arith.constant 0 : i32
    %c0_i32_0 = arith.constant 0 : i32
    return %arg0, %c0_i32 : i32, i32
  }
}

</mosaic_0001>

<bundles_post_ra>
// kernel: mul.5
= control target key start
LH: loop header
LB: loop body
LE: loop exit
PB: predicated region body
PF: predicated region fallthrough
CT: control target
= control target key end

     0   :  { %vm8_vm0 = vcmask 523264   ;;  %s23_s8 = smov 64   ;;  %vm14_vm1 = vcmask 1048064   ;;  %s40_s0 = inlined_call_operand.vmem [shape: f32[3,64], index: 0, kind: input, shape index: {}]   ;;  %s41_s1 = inlined_call_operand.vmem [shape: f32[192], index: 1, kind: output, shape index: {}]  }
   0x1   :  { %v4_v0 = vld [vmem:[%s40_s0] sm:$0xf]  ;;  %s6_s0 = smov 3 }
   0x2   :  { %5 = vst [vmem:[#allocation1] sm:$0xf] %v4_v0 }
   0x9   :  { %v11_v1 = vld [vmem:[#allocation1 + $0x1] sm:$0x1]   ;;  %v7_v2 = vld [vmem:[#allocation1] ss:$2 sm:%s6_s0]  }
   0xa   :  { %12 = vrot.lane.b32.xlu0 %v11_v1, %s23_s8  ;;  %9 = vst.msk [vmem:[#allocation0] sm:$0x3] %vm8_vm0, %v7_v2  }
  0x7c   :  { %v13_v3 = vpop.permute.xlu0 %12  }
  0x7d   :  { %15 = vst.msk [vmem:[#allocation0] sm:$0x1] %vm14_vm1, %v13_v3  }
  0x84   :  { %v19_v4 = vld [vmem:[#allocation0] sm:$0x3] }
  0x85   :  { %21 = vst [vmem:[%s41_s1] sm:$0x3] %v19_v4 }

// kernel: crop_and_normalize_classify.1
= control target key start
LH: loop header
LB: loop body
LE: loop exit
PB: predicated region body
PF: predicated region fallthrough
CT: control target
= control target key end

     0   :  { %v218_v0 = vmov 0   ;;  %vm124_vm0 = vcmask 523264   ;;  %s284_s1 = inlined_call_operand.vmem [shape: bf16[192,128], index: 1, kind: input, shape index: {}]   ;;  %s285_s0 = inlined_call_operand.vmem [shape: bf16[8,192], index: 0, kind: input, shape index: {}]   ;;  %s286_s2 = inlined_call_operand.vmem [shape: f32[1,128], index: 2, kind: input, shape index: {}]   ;;  %s287_s3 = inlined_call_operand.vmem [shape: f32[8,128], index: 3, kind: output, shape index: {}]  }
   0x1   :  { %128 = vmatprep.subr.bf16.mxu0 %v218_v0  ;;  %v204_v1 = vld [vmem:[%s284_s1] sm:$0xff]   ;;  %v205_v2 = vld [vmem:[%s284_s1 + $0x8] sm:$0xff]   ;;  %v206_v3 = vld [vmem:[%s284_s1 + $0x10] sm:$0xff]  }
   0x2   :  { %129 = vmatpush1.bf16.msra.mxu0 %v204_v1  ;;  %v207_v4 = vld [vmem:[%s284_s1 + $0x18] sm:$0xff]   ;;  %v21_v5 = vld [vmem:[%s285_s0] sm:$0xff]  ;;  %v209_v8 = vld [vmem:[%s284_s1 + $0x28] sm:$0xff]  }
   0x3   :  { %130 = vmatprep.subr.bf16.mxu0 %v218_v0  ;;  %v188_v6 = vcombine.high %v21_v5, %v21_v5  ;;  %v208_v7 = vld [vmem:[%s284_s1 + $0x20] sm:$0xff]   ;;  %v210_v9 = vld [vmem:[%s284_s1 + $0x30] sm:$0xff]   ;;  %v211_v10 = vld [vmem:[%s284_s1 + $0x38] sm:$0xff]   ;;  %v187_v15 = vcombine.low %v21_v5, %v21_v5 }
   0x4   :  { %v212_v11 = vld [vmem:[%s284_s1 + $0x40] sm:$0xff]   ;;  %v213_v12 = vld [vmem:[%s284_s1 + $0x48] sm:$0xff]   ;;  %v214_v13 = vld [vmem:[%s284_s1 + $0x50] sm:$0xff]  }
   0x5   :  { %201 = vmatprep.mubr.msk.bf16.mxu0 %vm124_vm0, %v188_v6  ;;  %v215_v14 = vld [vmem:[%s284_s1 + $0x58] sm:$0xff]   ;;  %v202_v16 = vld [vmem:[%s286_s2] ss:$0 sm:$0xff] }
   0x6   :  { %131 = vmatpush1.bf16.msra.mxu0 %v205_v2 }
   0x7   :  { %132 = vmatprep.subr.bf16.mxu0 %v218_v0 }
   0xa   :  { %133 = vmatpush1.bf16.msra.mxu0 %v206_v3 }
   0xb   :  { %134 = vmatprep.subr.bf16.mxu0 %v218_v0 }
   0xe   :  { %135 = vmatpush1.bf16.msra.mxu0 %v207_v4 }
   0xf   :  { %136 = vmatprep.subr.bf16.mxu0 %v218_v0 }
  0x12   :  { %137 = vmatpush1.bf16.msra.mxu0 %v208_v7 }
  0x13   :  { %138 = vmatprep.subr.bf16.mxu0 %v218_v0 }
  0x16   :  { %139 = vmatpush1.bf16.msra.mxu0 %v209_v8 }
  0x17   :  { %140 = vmatprep.subr.bf16.mxu0 %v218_v0 }
  0x1a   :  { %141 = vmatpush1.bf16.msra.mxu0 %v210_v9 }
  0x1b   :  { %142 = vmatprep.subr.bf16.mxu0 %v218_v0 }
  0x1e   :  { %143 = vmatpush1.bf16.msra.mxu0 %v211_v10 }
  0x1f   :  { %144 = vmatprep.subr.bf16.mxu0 %v218_v0 }
  0x22   :  { %145 = vmatpush1.bf16.msra.mxu0 %v212_v11 }
  0x23   :  { %146 = vmatprep.subr.bf16.mxu0 %v218_v0 }
  0x26   :  { %147 = vmatpush1.bf16.msra.mxu0 %v213_v12 }
  0x27   :  { %148 = vmatprep.subr.bf16.mxu0 %v218_v0 }
  0x2a   :  { %149 = vmatpush1.bf16.msra.mxu0 %v214_v13 }
  0x2b   :  { %150 = vmatprep.subr.bf16.mxu0 %v218_v0 }
  0x2e   :  { %151 = vmatpush1.bf16.msra.mxu0 %v215_v14 }
  0x31   :  { %161 = vmatmul.mubr.bf16.vlgmr.msra.gmra.mrb[0].mxu0 %v187_v15 }
 0x104   :  { %v162_v17 = vpop.f32.mrb[0].mxu0 }
 0x105   :  { %v181_v18 = vadd.f32 %v202_v16, %v162_v17  ;;  %v164_v19 = vpop.f32.mrb[1].mxu0 }
 0x106   :  { %v165_v20 = vpop.f32.mrb[2].mxu0 }
 0x107   :  { %182 = vst [vmem:[%s287_s3] sm:$0xff] %v181_v18  ;;  %v166_v21 = vpop.f32.mrb[3].mxu0 }

</bundles_post_ra>
